<compile_context>
chip_gen: v7x
topology: tpu7x:2x2x1
jax: 0.10.0
libtpu: 0.0.40
codegen_flags: <defaults>
</compile_context>

<pallas_src>
import functools

import jax
import jax.numpy as jnp
from jax import lax
from jax.experimental import pallas as pl
from jax.experimental.pallas import tpu as pltpu


def _round_up(x, m):
    return (x + m - 1) // m * m


def _mlp_kernel(x_ref, w1_ref, b1_ref, w2_ref, b2_ref, o_ref, *, h_chunk, n_chunks):
    """relu(x @ W1 + b1) @ W2 + b2 with the hidden dim split into h_chunk-wide
    slabs so the live intermediate stays (block_b, h_chunk) instead of
    (block_b, H) -- no VMEM spill of the full activation between the matmuls."""
    # Cast the streamed x tile to the MXU compute dtype once per grid step.
    x = x_ref[...].astype(w1_ref.dtype)
    b_dim = x.shape[0]
    a_dim = o_ref.shape[-1]

    def body(k, acc):
        s = pl.multiple_of(k * h_chunk, h_chunk)
        # First linear slab: (block_b, D) @ (D, h_chunk) -> f32 on the MXU.
        h = jnp.dot(x, w1_ref[:, pl.ds(s, h_chunk)],
                    preferred_element_type=jnp.float32)
        # Bias + ReLU in f32 on the VPU (works on every generation incl. v5e).
        h = jnp.maximum(h + b1_ref[:, pl.ds(s, h_chunk)], 0.0)
        # Second linear slab accumulated into the (block_b, A_p) f32 accumulator.
        return acc + jnp.dot(h.astype(w2_ref.dtype), w2_ref[pl.ds(s, h_chunk), :],
                             preferred_element_type=jnp.float32)

    acc = jnp.zeros((b_dim, a_dim), jnp.float32)
    acc = lax.fori_loop(0, n_chunks, body, acc, unroll=True)
    # Lane-dense (A_p multiple of 128) store in the caller's dtype.
    o_ref[...] = (acc + b2_ref[...]).astype(o_ref.dtype)


def prepare_probe_params(w1, b1, w2, b2, *, compute_dtype=jnp.bfloat16, lane=128):
    """One-time parameter packing (call at parameter-load time, NOT per step):
    pads the hidden / attribute lane dims to multiples of 128 and casts the
    weights to the MXU compute dtype.  Zero padding is inert through
    matmul / bias / ReLU."""
    D, H = w1.shape
    H2, A = w2.shape
    assert H == H2 and b1.shape[-1] == H and b2.shape[-1] == A
    H_p = _round_up(H, lane)
    A_p = _round_up(A, lane)
    f32 = jnp.float32
    w1_p = jnp.zeros((D, H_p), compute_dtype).at[:, :H].set(w1.astype(compute_dtype))
    b1_p = jnp.zeros((1, H_p), f32).at[:, :H].set(jnp.reshape(b1, (1, H)).astype(f32))
    w2_p = jnp.zeros((H_p, A_p), compute_dtype).at[:H, :A].set(w2.astype(compute_dtype))
    b2_p = jnp.zeros((1, A_p), f32).at[:, :A].set(jnp.reshape(b2, (1, A)).astype(f32))
    return w1_p, b1_p, w2_p, b2_p


@functools.partial(jax.jit, static_argnames=("num_attributes", "block_b", "h_chunk"))
def attribute_probe_forward(x, w1_p, b1_p, w2_p, b2_p, *, num_attributes,
                            block_b=256, h_chunk=256):
    """Fused forward of AttributeProbe: relu(x @ w1 + b1) @ w2 + b2.

    x: (B, D).  w1_p/b1_p/w2_p/b2_p come from prepare_probe_params().
    Returns (B, num_attributes) logits in x.dtype.
    """
    B, D = x.shape
    Dw, H_p = w1_p.shape
    H_p2, A_p = w2_p.shape
    assert D == Dw and H_p == H_p2 and A_p >= num_attributes

    # Don't use a batch tile larger than the (sublane-rounded) batch itself.
    block_b = min(block_b, _round_up(B, 8))
    # Hidden-dim slab size (K depth per MXU pass); fall back to 128 if it does
    # not divide the padded hidden dim.
    if H_p % h_chunk != 0:
        h_chunk = 128
    n_chunks = H_p // h_chunk

    n_blocks = pl.cdiv(B, block_b)   # partial last block -> masked output store
    out_dtype = x.dtype

    # VMEM budget: double-buffered x/out tiles + (double-buffered) resident
    # weights/biases, with headroom.  >=32 MiB (raises v5e's 16 MiB default),
    # capped at 64 MiB (v7x physical VMEM per TensorCore).
    est = (2 * (block_b * D * x.dtype.itemsize
                + block_b * A_p * jnp.dtype(out_dtype).itemsize)
           + 2 * (w1_p.nbytes + b1_p.nbytes + w2_p.nbytes + b2_p.nbytes))
    vmem_limit = int(min(max(4 * est, 32 * 1024 * 1024), 64 * 1024 * 1024))

    flops = 2 * B * H_p * (D + A_p)
    bytes_accessed = (x.nbytes + w1_p.nbytes + b1_p.nbytes + w2_p.nbytes
                      + b2_p.nbytes + B * A_p * jnp.dtype(out_dtype).itemsize)

    kernel = functools.partial(_mlp_kernel, h_chunk=h_chunk, n_chunks=n_chunks)

    out_p = pl.pallas_call(
        kernel,
        out_shape=jax.ShapeDtypeStruct((B, A_p), out_dtype),
        grid_spec=pltpu.PrefetchScalarGridSpec(
            num_scalar_prefetch=0,
            grid=(n_blocks,),
            in_specs=[
                pl.BlockSpec((block_b, D), lambda i: (i, 0)),   # x tile (streams)
                pl.BlockSpec((Dw, H_p), lambda i: (0, 0)),      # W1 (resident)
                pl.BlockSpec((1, H_p), lambda i: (0, 0)),       # b1 (resident)
                pl.BlockSpec((H_p, A_p), lambda i: (0, 0)),     # W2 (resident)
                pl.BlockSpec((1, A_p), lambda i: (0, 0)),       # b2 (resident)
            ],
            out_specs=pl.BlockSpec((block_b, A_p), lambda i: (i, 0)),
        ),
        compiler_params=pltpu.CompilerParams(
            dimension_semantics=("parallel",),
            vmem_limit_bytes=vmem_limit),
        cost_estimate=pl.CostEstimate(flops=flops, transcendentals=0,
                                      bytes_accessed=bytes_accessed),
    )(x, w1_p, b1_p, w2_p, b2_p)

    # Lane-only slice of the zero-padded attribute columns (no dtype cast:
    # the kernel already stored in the caller's dtype).
    return out_p[:, :num_attributes]


def _init_linear(key, fan_in, fan_out, dtype=jnp.float32):
    """PyTorch-style nn.Linear init (uniform +-1/sqrt(fan_in)).

    Returns weight already transposed to (fan_in, fan_out) and bias (1, fan_out).
    """
    kw, kb = jax.random.split(key)
    bound = 1.0 / jnp.sqrt(fan_in)
    w = jax.random.uniform(kw, (fan_in, fan_out), dtype, -bound, bound)
    b = jax.random.uniform(kb, (1, fan_out), dtype, -bound, bound)
    return w, b


if __name__ == "__main__":
    # Representative probe shapes: embeddings (B, input_dim) -> attribute
    # logits (B, num_attributes); hidden_dim matches the PyTorch default 512.
    # B=200 with block_b=128 gives an even 2-step parallel grid (both v7x
    # TensorCores busy) and exercises the masked partial last block.
    B, INPUT_DIM, HIDDEN_DIM, NUM_ATTRS = 200, 64, 512, 40

    root = jax.random.PRNGKey(0)
    kx, k1, k2 = jax.random.split(root, 3)

    x = jax.random.normal(kx, (B, INPUT_DIM), jnp.float32)
    w1, b1 = _init_linear(k1, INPUT_DIM, HIDDEN_DIM)
    w2, b2 = _init_linear(k2, HIDDEN_DIM, NUM_ATTRS)

    # One-time parameter packing (padding + bf16 cast), hoisted out of the
    # per-call forward path.
    params = jax.block_until_ready(prepare_probe_params(w1, b1, w2, b2))

    logits = attribute_probe_forward(x, *params, num_attributes=NUM_ATTRS,
                                     block_b=128, h_chunk=256)
    logits = jax.block_until_ready(logits)
    assert logits.shape == (B, NUM_ATTRS)
    assert logits.dtype == x.dtype

    # Reference mirroring the kernel's bf16-operand / f32-accumulate numerics.
    bf = lambda a: a.astype(jnp.bfloat16).astype(jnp.float32)
    h_ref = jnp.maximum(bf(x) @ bf(w1) + b1, 0.0)
    ref = bf(h_ref) @ bf(w2) + b2
    assert jnp.allclose(logits, ref, atol=2e-3, rtol=2e-3)

    # Loose sanity check against the pure-f32 math of the original module.
    ref_f32 = jnp.maximum(x @ w1 + b1, 0.0) @ w2 + b2
    assert jnp.allclose(logits, ref_f32, atol=5e-2, rtol=5e-2)

    print("KERNEL_OK")
</pallas_src>

<mosaic_0001>
module attributes {stable_mosaic.version = 11 : i64} {
  func.func @_mlp_kernel(%arg0: i32, %arg1: memref<128x64xf32, #tpu.memory_space<vmem>>, %arg2: memref<64x512xbf16, #tpu.memory_space<vmem>>, %arg3: memref<1x512xf32, #tpu.memory_space<vmem>>, %arg4: memref<512x128xbf16, #tpu.memory_space<vmem>>, %arg5: memref<1x128xf32, #tpu.memory_space<vmem>>, %arg6: memref<128x128xf32, #tpu.memory_space<vmem>>) attributes {dimension_semantics = [#tpu.dimension_semantics<parallel>], iteration_bounds = array<i64: 2>, scalar_prefetch = 0 : i64, scratch_operands = 0 : i64, tpu.core_type = #tpu.core_type<tc>, window_params = [{transform_indices = @transform_0, window_bounds = array<i64: 128, 64>}, {pipeline_mode = #tpu.pipeline_mode<synchronous>, transform_indices = @transform_1, window_bounds = array<i64: 64, 512>}, {pipeline_mode = #tpu.pipeline_mode<synchronous>, transform_indices = @transform_2, window_bounds = array<i64: 1, 512>}, {pipeline_mode = #tpu.pipeline_mode<synchronous>, transform_indices = @transform_3, window_bounds = array<i64: 512, 128>}, {pipeline_mode = #tpu.pipeline_mode<synchronous>, transform_indices = @transform_4, window_bounds = array<i64: 1, 128>}, {transform_indices = @transform_5, window_bounds = array<i64: 128, 128>}]} {
    %c0 = arith.constant 0 : index
    %c0_0 = arith.constant 0 : index
    %0 = vector.load %arg1[%c0, %c0_0] : memref<128x64xf32, #tpu.memory_space<vmem>>, vector<128x64xf32>
    %1 = arith.truncf %0 : vector<128x64xf32> to vector<128x64xbf16>
    %cst = arith.constant 0.000000e+00 : f32
    %2 = vector.broadcast %cst : f32 to vector<128x128xf32>
    %c0_i32 = arith.constant 0 : i32
    %c256_i32 = arith.constant 256 : i32
    %3 = arith.muli %c0_i32, %c256_i32 : i32
    %4 = tpu.assume_multiple %3, 256 : i32
    %c0_1 = arith.constant 0 : index
    %5 = arith.index_cast %4 : i32 to index
    %6 = vector.load %arg2[%c0_1, %5] : memref<64x512xbf16, #tpu.memory_space<vmem>>, vector<64x256xbf16>
    %cst_2 = arith.constant dense<0.000000e+00> : vector<128x256xf32>
    %7 = tpu.matmul %1, %6, %cst_2 {dimension_numbers = #tpu.dot_dimension_numbers<[1], [0], [0], [1], [0, 0, 1, 1], [], []>} : vector<128x64xbf16>, vector<64x256xbf16>, vector<128x256xf32> -> vector<128x256xf32>
    %c0_3 = arith.constant 0 : index
    %8 = arith.index_cast %4 : i32 to index
    %9 = vector.load %arg3[%c0_3, %8] : memref<1x512xf32, #tpu.memory_space<vmem>>, vector<1x256xf32>
    %10 = vector.broadcast %9 : vector<1x256xf32> to vector<128x256xf32>
    %11 = arith.addf %7, %10 : vector<128x256xf32>
    %cst_4 = arith.constant 0.000000e+00 : f32
    %12 = vector.broadcast %cst_4 : f32 to vector<128x256xf32>
    %13 = arith.maximumf %11, %12 : vector<128x256xf32>
    %14 = arith.truncf %13 : vector<128x256xf32> to vector<128x256xbf16>
    %15 = arith.index_cast %4 : i32 to index
    %c0_5 = arith.constant 0 : index
    %16 = vector.load %arg4[%15, %c0_5] : memref<512x128xbf16, #tpu.memory_space<vmem>>, vector<256x128xbf16>
    %cst_6 = arith.constant dense<0.000000e+00> : vector<128x128xf32>
    %17 = tpu.matmul %14, %16, %cst_6 {dimension_numbers = #tpu.dot_dimension_numbers<[1], [0], [0], [1], [0, 0, 1, 1], [], []>} : vector<128x256xbf16>, vector<256x128xbf16>, vector<128x128xf32> -> vector<128x128xf32>
    %18 = arith.addf %2, %17 : vector<128x128xf32>
    %c1_i32 = arith.constant 1 : i32
    %c256_i32_7 = arith.constant 256 : i32
    %19 = arith.muli %c1_i32, %c256_i32_7 : i32
    %20 = tpu.assume_multiple %19, 256 : i32
    %c0_8 = arith.constant 0 : index
    %21 = arith.index_cast %20 : i32 to index
    %22 = vector.load %arg2[%c0_8, %21] : memref<64x512xbf16, #tpu.memory_space<vmem>>, vector<64x256xbf16>
    %cst_9 = arith.constant dense<0.000000e+00> : vector<128x256xf32>
    %23 = tpu.matmul %1, %22, %cst_9 {dimension_numbers = #tpu.dot_dimension_numbers<[1], [0], [0], [1], [0, 0, 1, 1], [], []>} : vector<128x64xbf16>, vector<64x256xbf16>, vector<128x256xf32> -> vector<128x256xf32>
    %c0_10 = arith.constant 0 : index
    %24 = arith.index_cast %20 : i32 to index
    %25 = vector.load %arg3[%c0_10, %24] : memref<1x512xf32, #tpu.memory_space<vmem>>, vector<1x256xf32>
    %26 = vector.broadcast %25 : vector<1x256xf32> to vector<128x256xf32>
    %27 = arith.addf %23, %26 : vector<128x256xf32>
    %cst_11 = arith.constant 0.000000e+00 : f32
    %28 = vector.broadcast %cst_11 : f32 to vector<128x256xf32>
    %29 = arith.maximumf %27, %28 : vector<128x256xf32>
    %30 = arith.truncf %29 : vector<128x256xf32> to vector<128x256xbf16>
    %31 = arith.index_cast %20 : i32 to index
    %c0_12 = arith.constant 0 : index
    %32 = vector.load %arg4[%31, %c0_12] : memref<512x128xbf16, #tpu.memory_space<vmem>>, vector<256x128xbf16>
    %cst_13 = arith.constant dense<0.000000e+00> : vector<128x128xf32>
    %33 = tpu.matmul %30, %32, %cst_13 {dimension_numbers = #tpu.dot_dimension_numbers<[1], [0], [0], [1], [0, 0, 1, 1], [], []>} : vector<128x256xbf16>, vector<256x128xbf16>, vector<128x128xf32> -> vector<128x128xf32>
    %34 = arith.addf %18, %33 : vector<128x128xf32>
    %c2_i32 = arith.constant 2 : i32
    %c0_14 = arith.constant 0 : index
    %c0_15 = arith.constant 0 : index
    %35 = vector.load %arg5[%c0_14, %c0_15] : memref<1x128xf32, #tpu.memory_space<vmem>>, vector<1x128xf32>
    %36 = vector.broadcast %35 : vector<1x128xf32> to vector<128x128xf32>
    %37 = arith.addf %34, %36 : vector<128x128xf32>
    %c0_16 = arith.constant 0 : index
    %c0_17 = arith.constant 0 : index
    %38 = vector.load %arg6[%c0_16, %c0_17] : memref<128x128xf32, #tpu.memory_space<vmem>>, vector<128x128xf32>
    tpu.vector_store %arg6[%c0_16, %c0_17], %37 {strides = array<i32>} : memref<128x128xf32, #tpu.memory_space<vmem>>, vector<128x128xf32>,
    return
  }
  func.func @transform_0(%arg0: i32) -> (i32, i32) {
    %c0_i32 = arith.constant 0 : i32
    %c0_i32_0 = arith.constant 0 : i32
    return %arg0, %c0_i32 : i32, i32
  }
  func.func @transform_1(%arg0: i32) -> (i32, i32) {
    %c0_i32 = arith.constant 0 : i32
    %c0_i32_0 = arith.constant 0 : i32
    %c0_i32_1 = arith.constant 0 : i32
    return %c0_i32, %c0_i32_0 : i32, i32
  }
  func.func @transform_2(%arg0: i32) -> (i32, i32) {
    %c0_i32 = arith.constant 0 : i32
    %c0_i32_0 = arith.constant 0 : i32
    %c0_i32_1 = arith.constant 0 : i32
    return %c0_i32, %c0_i32_0 : i32, i32
  }
  func.func @transform_3(%arg0: i32) -> (i32, i32) {
    %c0_i32 = arith.constant 0 : i32
    %c0_i32_0 = arith.constant 0 : i32
    %c0_i32_1 = arith.constant 0 : i32
    return %c0_i32, %c0_i32_0 : i32, i32
  }
  func.func @transform_4(%arg0: i32) -> (i32, i32) {
    %c0_i32 = arith.constant 0 : i32
    %c0_i32_0 = arith.constant 0 : i32
    %c0_i32_1 = arith.constant 0 : i32
    return %c0_i32, %c0_i32_0 : i32, i32
  }
  func.func @transform_5(%arg0: i32) -> (i32, i32) {
    %c0_i32 = arith.constant 0 : i32
    %c0_i32_0 = arith.constant 0 : i32
    return %arg0, %c0_i32 : i32, i32
  }
}

</mosaic_0001>

<bundles_post_ra>
// kernel: attribute_probe_forward.1
= control target key start
LH: loop header
LB: loop body
LE: loop exit
PB: predicated region body
PF: predicated region fallthrough
CT: control target
= control target key end

     0   :  { %10 = vsyncpa [#allocation3], 0  ;;  %s2099_s18 = smov 0   ;;  %s2101_s19 = smov 0   ;;  %s2535_s0 = inlined_call_operand.vmem [shape: f32[200,64], index: 0, kind: input, shape index: {}]   ;;  %s2536_s1 = inlined_call_operand.hbm [shape: bf16[64,512], index: 1, kind: input, shape index: {}]   ;;  %s2537_s2 = inlined_call_operand.vmem [shape: f32[1,512], index: 2, kind: input, shape index: {}]   ;;  %s2538_s3 = inlined_call_operand.vmem [shape: bf16[512,128], index: 3, kind: input, shape index: {}]   ;;  %s2539_s4 = inlined_call_operand.vmem [shape: f32[1,128], index: 4, kind: input, shape index: {}]   ;;  %s2540_s5 = inlined_call_operand.vmem [shape: f32[200,128], index: 5, kind: output, shape index: {}]  }
   0x1   :  { %s2103_s20 = smov 0  }
   0x2 LB: > { %s2112_s21 = sadd.s32 4294967295, %s2031_s20   ;;  %s2114_s22 = sadd.s32 1, %s2031_s20   ;;  %s2031_s20 = sphi %s2103_s20, %s2555_s20   ;;  %s2027_s19 = sphi %s2101_s19, %s2554_s19   ;;  %s2023_s18 = sphi %s2099_s18, %s2553_s18  }
   0x3   : > { %s130_s23 = ssub.s32 %s2031_s20, %s2114_s22  ;;  %s133_s24 = sadd.s32 1, %s2027_s19 }
   0x4   : > { %p131_p0 = scmp.eq.s32.totalorder %s130_s23, 0  ;;  %p143_p1 = scmp.ne.s32.totalorder %s2027_s19, %s2023_s18 }
   0x5   : > { %p144_p2 = scmp.eq.s32.totalorder %s2112_s21, 1  ;;  %p1533_p3 = scmp.ge.s32.totalorder %s2031_s20, 1 }
   0x6   : > { %s2122_s25 = scalar_select %p131_p0, %s2027_s19, %s133_s24  }
   0x7   : > { %p2124_p4 = por %p144_p2, %p143_p1  ;;  %p157_p5 = scmp.lt.s32.totalorder %s2031_s20, 3 }
   0x8   : > { %p2541_p6 = scmp.eq.s32.totalorder %s2112_s21, 0  ;;  %s2065_s28 = smov [#allocation2]  }
   0x9   : > { %s2543_s26 = scalar_select %p2124_p4, 1, 0 }
   0xa   : > { %p2129_p7 = pnand %p1533_p3, %p157_p5  ;;  %s169_s29 = sshll.u32 %s2065_s28, 4  ;;  %s170_s29 = int_to_ptr.vmem [resolvable:$true] %s169_s29 }
   0xb   : > { %s1945_s8 = scalar_lea.hbm %s2536_s1, 2048 }
   0xc   : > { %s2544_s27 = scalar_select %p2129_p7, 1, 0 }
   0xd   : > { %p1791_p8 = pneg %p2129_p7  ;;  %p1946_p10 = scmp.ne.s32.totalorder %s2536_s1, %s1945_s8 }
   0xe   : > { %p1952_p0 = scmp.lt.u32.totalorder %s1945_s8, %s2536_s1 }
   0xf   : > { %p2137_p9 = pnand %p2541_p6, %p1791_p8 }
  0x11   : > { %p1947_p11 = pneg %p2137_p9 }
  0x13   : > { %p1948_p12 = pnand %p1947_p11, %p1946_p10 }
  0x15   : > { %p1949_p13 = pneg %p1948_p12 }
  0x17   : > { %p1954_p1 = pnand %p1952_p0, %p1949_p13 }
  0x19   : > { %1957 = shalt.err (!%p1954_p1)
}
  0x1a   : > { %s1958_s13 = scalar_lea.vmem %s170_s29, 2048  ;;  %p1966_p8 = scmp.lt.s32.totalorder %s170_s29, %s170_s29 }
  0x1b   : > { %p1959_p2 = scmp.ne.s32.totalorder %s170_s29, %s1958_s13  ;;  %p1967_p6 = scmp.lt.s32.totalorder %s1958_s13, %s1958_s13 }
  0x1d   : > { %p1961_p3 = pnand %p1959_p2, %p1947_p11  ;;  %p1968_p4 = por %p1967_p6, %p1966_p8 }
  0x1f   : > { %p1962_p5 = pneg %p1961_p3 }
  0x21   : > { %p1969_p7 = pnand %p1968_p4, %p1962_p5 }
  0x23   : > { %1972 = shalt.err (!%p1969_p7)
}
  0x24   : > { %s2066_s14 = smov 256   ;;  %s2067_s15 = smov 16  }
  0x25   : > { %1794 = dma.hbm_to_vmem [thread:$0]  (!%p2137_p9), %s2536_s1, 2048, %s170_s29, [#allocation3], %s2066_s14, %s2066_s14, %s2067_s15  }
  0x26   : > { %p2546_p10 = scmp.ne.s32.totalorder %s2544_s27, 0 }
  0x27   : > { %p2547_p12 = scmp.eq.s32.totalorder (!%p2546_p10), %s2112_s21, 0 }
  0x28   : > { %211 = sbr.rel (%p2546_p10) target bundleno = 615 (0x267), region = 40 }
  0x2f   : > { %2018 = dma.done.wait (%p2547_p12), [#allocation3], 2048   ;;  %p2548_p11 = pmov %p2547_p12 }
  0x30   : > { %v2068_v0 = vmov 0   ;;  %s2166_s20 = sshll.u32 %s2112_s21, 4  ;;  %v1889_v1 = vld [vmem:[#allocation2 + $0x4] ss:$16 sps:$4 sm:$0xff]   ;;  %v1891_v2 = vld [vmem:[#allocation2 + $0xc] ss:$16 sps:$4 sm:$0xff]  }
  0x31   : > { %2020 = vsyncadd (%p2548_p11), [#allocation3], 4294965248  ;;  %403 = vmatprep.mubr.bf16.mxu0 %v2068_v0  ;;  %658 = vmatprep.mubr.bf16.mxu1 %v2068_v0  ;;  %p247_p4 = scmp.lt.s32.totalorder %s2166_s20, 24  ;;  %v1893_v3 = vld [vmem:[#allocation2] ss:$16 sps:$4 sm:$0xff]   ;;  %vm346_vm0 = vcmask 523264  }
  0x32   : > { %371 = vmatprep.subr.bf16.mxu0 %v1889_v1  ;;  %v1894_v4 = vld [vmem:[#allocation2 + $0x8] ss:$16 sps:$4 sm:$0xff]   ;;  %626 = vmatprep.subr.bf16.mxu1 %v1891_v2  ;;  %v1895_v5 = vld [vmem:[#allocation2 + $0x24] ss:$16 sps:$4 sm:$0xff]   ;;  %v1897_v6 = vld [vmem:[#allocation2 + $0x2c] ss:$16 sps:$4 sm:$0xff]  }
  0x33   : > { %s248_s23 = scalar_select %p247_p4, %s2166_s20, 24  ;;  %372 = vmatpush1.bf16.msra.mxu0 %v1893_v3  ;;  %627 = vmatpush1.bf16.msra.mxu1 %v1894_v4  ;;  %v1899_v7 = vld [vmem:[#allocation2 + $0x20] ss:$16 sps:$4 sm:$0xff]   ;;  %v1900_v8 = vld [vmem:[#allocation2 + $0x28] ss:$16 sps:$4 sm:$0xff]  }
  0x34   : > { %373 = vmatprep.subr.bf16.mxu0 %v1895_v5  ;;  %628 = vmatprep.subr.bf16.mxu1 %v1897_v6  ;;  %v1901_v9 = vld [vmem:[#allocation2 + $0x44] ss:$16 sps:$4 sm:$0xff]   ;;  %v1903_v10 = vld [vmem:[#allocation2 + $0x4c] ss:$16 sps:$4 sm:$0xff]   ;;  %v1905_v11 = vld [vmem:[#allocation2 + $0x40] ss:$16 sps:$4 sm:$0xff]  }
  0x35   : > { %s1540_s24 = sshll.u32 %s248_s23, 3  ;;  %v1906_v12 = vld [vmem:[#allocation2 + $0x48] ss:$16 sps:$4 sm:$0xff]   ;;  %v1907_v13 = vld [vmem:[#allocation2 + $0x64] ss:$16 sps:$4 sm:$0xff]   ;;  %s239_s28 = sand.u32 1, %s2023_s18  }
  0x36   : > { %v1909_v14 = vld [vmem:[#allocation2 + $0x6c] ss:$16 sps:$4 sm:$0xff]   ;;  %s2173_s29 = scalar_lea.vmem %s2535_s0, %s1540_s24  ;;  %v1911_v15 = vld [vmem:[#allocation2 + $0x60] ss:$16 sps:$4 sm:$0xff]   ;;  %v1912_v16 = vld [vmem:[#allocation2 + $0x68] ss:$16 sps:$4 sm:$0xff]  }
  0x37   : > { %374 = vmatpush1.bf16.msra.mxu0 %v1899_v7  ;;  %629 = vmatpush1.bf16.msra.mxu1 %v1900_v8  ;;  %v262_v17 = vld [vmem:[%s2173_s29] sm:$0xff]  ;;  %v263_v18 = vld [vmem:[%s2173_s29 + $0x8] sm:$0xff]  ;;  %v264_v22 = vld [vmem:[%s2173_s29 + $0x10] sm:$0xff]  ;;  %s1538_s30 = sshll.u32 %s239_s28, 7  ;;  %p2549_p6 = scmp.ne.s32.totalorder %s2543_s26, 0 }
  0x38   : > { %375 = vmatprep.subr.bf16.mxu0 %v1901_v9  ;;  %630 = vmatprep.subr.bf16.mxu1 %v1903_v10  ;;  %v278_v19 = vpack.c.bf16 %v263_v18, %v262_v17  ;;  %v1913_v20 = vld [vmem:[%s2538_s3 + $0xc0] sm:$0xff]   ;;  %v265_v23 = vld [vmem:[%s2173_s29 + $0x18] sm:$0xff]  ;;  %v1917_v26 = vld [vmem:[%s2538_s3 + $0xc8] sm:$0xff]   ;;  %v296_v9 = vlaneseq  ;;  %s2402_s18 = scalar_lea.vmem [#allocation4], %s1538_s30   ;;  %s1253_s8 = ssub.s32 (%p2549_p6), 25, %s2166_s20 }
  0x39   : > { %v1914_v21 = vld [vmem:[%s2538_s3 + $0x40] sm:$0xff]   ;;  %v1918_v27 = vld [vmem:[%s2538_s3 + $0x48] sm:$0xff]   ;;  %v279_v29 = vpack.c.bf16 %v265_v23, %v264_v22  ;;  %v1921_v31 = vld [vmem:[%s2538_s3 + $0xd0] sm:$0xff]   ;;  %s1656_s9 = sshll.u32 (%p2549_p6), %s2112_s21, 7  ;;  %p1254_p7 = scmp.lt.s32.totalorder (%p2549_p6), %s1253_s8, 16 }
  0x3a   : > { %v1915_v24 = vld [vmem:[%s2538_s3 + $0x80] sm:$0xff]   ;;  %v1919_v28 = vld [vmem:[%s2538_s3 + $0x88] sm:$0xff]   ;;  %v1922_v32 = vld [vmem:[%s2538_s3 + $0x50] sm:$0xff]   ;;  %v297_v10 = vshrl.u32 %v296_v9, 7  ;;  %s2442_s12 = scalar_lea.vmem (%p2549_p6), %s2540_s5, %s1656_s9  }
  0x3b   : > { %376 = vmatpush1.bf16.msra.mxu0 %v1905_v11  ;;  %631 = vmatpush1.bf16.msra.mxu1 %v1906_v12  ;;  %v1916_v25 = vld [vmem:[%s2538_s3] sm:$0xff]   ;;  %v1920_v30 = vld [vmem:[%s2538_s3 + $0x8] sm:$0xff]   ;;  %v1923_v35 = vld [vmem:[%s2538_s3 + $0x90] sm:$0xff]  }
  0x3c   : > { %377 = vmatprep.subr.bf16.mxu0 %v1907_v13  ;;  %632 = vmatprep.subr.bf16.mxu1 %v1909_v14  ;;  %v266_v33 = vld [vmem:[%s2173_s29 + $0x20] sm:$0xff]  ;;  %v267_v34 = vld [vmem:[%s2173_s29 + $0x28] sm:$0xff]  ;;  %v1924_v36 = vld [vmem:[%s2538_s3 + $0x10] sm:$0xff]   ;;  %v298_v11 = vsub.s32 0, %v297_v10  ;;  %v302_v14 = vsub.s32 1, %v297_v10 }
  0x3d   : > { %v1925_v37 = vld [vmem:[%s2538_s3 + $0xd8] sm:$0xff]   ;;  %v280_v40 = vpack.c.bf16 %v267_v34, %v266_v33  ;;  %v1929_v42 = vld [vmem:[%s2538_s3 + $0xe0] sm:$0xff]   ;;  %v268_v44 = vld [vmem:[%s2173_s29 + $0x30] sm:$0xff] }
  0x3e   : > { %v1926_v38 = vld [vmem:[%s2538_s3 + $0x58] sm:$0xff]   ;;  %v1930_v43 = vld [vmem:[%s2538_s3 + $0x60] sm:$0xff]   ;;  %v1933_v48 = vld [vmem:[%s2538_s3 + $0xe8] sm:$0xff]  }
  0x3f   : > { %378 = vmatpush1.bf16.msra.mxu0 %v1911_v15  ;;  %633 = vmatpush1.bf16.msra.mxu1 %v1912_v16  ;;  %v1927_v39 = vld [vmem:[%s2538_s3 + $0x98] sm:$0xff]   ;;  %v1931_v46 = vld [vmem:[%s2538_s3 + $0xa0] sm:$0xff]   ;;  %v1934_v49 = vld [vmem:[%s2538_s3 + $0x68] sm:$0xff]  }
  0x40   : > { %1659 = vmatprep.subr.bf16.mxu0 %v1913_v20  ;;  %1723 = vmatprep.subr.bf16.mxu1 %v1914_v21  ;;  %v1928_v41 = vld [vmem:[%s2538_s3 + $0x18] sm:$0xff]   ;;  %v1932_v47 = vld [vmem:[%s2538_s3 + $0x20] sm:$0xff]   ;;  %v1935_v50 = vld [vmem:[%s2538_s3 + $0xa8] sm:$0xff]  }
  0x41   : > { %v269_v45 = vld [vmem:[%s2173_s29 + $0x38] sm:$0xff]  ;;  %v1936_v52 = vld [vmem:[%s2538_s3 + $0x28] sm:$0xff]   ;;  %v1937_v53 = vld [vmem:[%s2538_s3 + $0xf0] sm:$0xff]  }
  0x42   : > { %1549 = vmatmul.mubr.msk.bf16.vlgmr.msra.gmra.mrb[0].mxu0 %vm346_vm0, %v278_v19  ;;  %1566 = vmatmul.mubr.msk.bf16.vlgmr.msra.gmra.mrb[0].mxu1 %vm346_vm0, %v278_v19  ;;  %v281_v51 = vpack.c.bf16 %v269_v45, %v268_v44  ;;  %v1938_v54 = vld [vmem:[%s2538_s3 + $0x70] sm:$0xff]   ;;  %v270_v55 = vld [vmem:[%s2173_s29 + $0x40] sm:$0xff]  ;;  %v271_v58 = vld [vmem:[%s2173_s29 + $0x48] sm:$0xff] }
  0x43   : > { %413 = vmatprep.mubr.bf16.mxu0 %v2068_v0  ;;  %668 = vmatprep.mubr.bf16.mxu1 %v2068_v0  ;;  %v1939_v56 = vld [vmem:[%s2538_s3 + $0xb0] sm:$0xff]   ;;  %v282_v59 = vpack.c.bf16 %v271_v58, %v270_v55  ;;  %v273_v61 = vld [vmem:[%s2173_s29 + $0x58] sm:$0xff]  ;;  %v274_v63 = vld [vmem:[%s2173_s29 + $0x60] sm:$0xff] }
  0x44   : > { %1660 = vmatpush3.bf16.msra.mxu0 %v1915_v24  ;;  %1724 = vmatpush3.bf16.msra.mxu1 %v1916_v25  ;;  %v1940_v57 = vld [vmem:[%s2538_s3 + $0x30] sm:$0xff]   ;;  %v275_v1 = vld [vmem:[%s2173_s29 + $0x68] sm:$0xff]  ;;  %v277_v4 = vld [vmem:[%s2173_s29 + $0x78] sm:$0xff] }
  0x45   : > { %1661 = vmatprep.subr.bf16.mxu0 %v1917_v26  ;;  %1725 = vmatprep.subr.bf16.mxu1 %v1918_v27  ;;  %v272_v60 = vld [vmem:[%s2173_s29 + $0x50] sm:$0xff]  ;;  %v284_v2 = vpack.c.bf16 %v275_v1, %v274_v63  ;;  %v1941_v6 = vld [vmem:[%s2538_s3 + $0xf8] sm:$0xff]   ;;  %v294_v12 = vld [vmem:[%s2537_s2] sm:$0x3] }
  0x46   : > { %v283_v62 = vpack.c.bf16 %v273_v61, %v272_v60  ;;  %v276_v3 = vld [vmem:[%s2173_s29 + $0x70] sm:$0xff]  ;;  %v1942_v7 = vld [vmem:[%s2538_s3 + $0x78] sm:$0xff]   ;;  %v1557_v13 = vld [vmem:[%s2537_s2 + $0x2] sm:$0x3]  ;;  %v2323_v15 = vrot.slane %v294_v12, %v298_v11  ;;  %v2327_v17 = vrot.slane %v294_v12, %v302_v14 }
  0x47   : > { %v285_v5 = vpack.c.bf16 %v277_v4, %v276_v3  ;;  %v1943_v8 = vld [vmem:[%s2538_s3 + $0xb8] sm:$0xff]   ;;  %v2325_v16 = vrot.slane %v1557_v13, %v298_v11  ;;  %v2329_v18 = vrot.slane %v1557_v13, %v302_v14 }
  0x48   : > { %1662 = vmatpush3.bf16.msra.mxu0 %v1919_v28  ;;  %1726 = vmatpush3.bf16.msra.mxu1 %v1920_v30 }
  0x49   : > { %1663 = vmatprep.subr.bf16.mxu0 %v1921_v31  ;;  %1727 = vmatprep.subr.bf16.mxu1 %v1922_v32 }
  0x4a   : > { %1550 = vmatmul.mubr.msk.bf16.gmra.mrb[4].mxu0 %vm346_vm0, %v279_v29  ;;  %1567 = vmatmul.mubr.msk.bf16.gmra.mrb[4].mxu1 %vm346_vm0, %v279_v29 }
  0x4b   : > { %423 = vmatprep.mubr.bf16.mxu0 %v2068_v0  ;;  %678 = vmatprep.mubr.bf16.mxu1 %v2068_v0 }
  0x4c   : > { %1664 = vmatpush3.bf16.msra.mxu0 %v1923_v35  ;;  %1728 = vmatpush3.bf16.msra.mxu1 %v1924_v36 }
  0x4d   : > { %1665 = vmatprep.subr.bf16.mxu0 %v1925_v37  ;;  %1729 = vmatprep.subr.bf16.mxu1 %v1926_v38 }
  0x50   : > { %1666 = vmatpush3.bf16.msra.mxu0 %v1927_v39  ;;  %1730 = vmatpush3.bf16.msra.mxu1 %v1928_v41 }
  0x51   : > { %1667 = vmatprep.subr.bf16.mxu0 %v1929_v42  ;;  %1731 = vmatprep.subr.bf16.mxu1 %v1930_v43 }
  0x52   : > { %1551 = vmatmul.mubr.msk.bf16.gmra.mrb[8].mxu0 %vm346_vm0, %v280_v40  ;;  %1568 = vmatmul.mubr.msk.bf16.gmra.mrb[8].mxu1 %vm346_vm0, %v280_v40 }
  0x53   : > { %433 = vmatprep.mubr.bf16.mxu0 %v2068_v0  ;;  %688 = vmatprep.mubr.bf16.mxu1 %v2068_v0 }
  0x54   : > { %1668 = vmatpush3.bf16.msra.mxu0 %v1931_v46  ;;  %1732 = vmatpush3.bf16.msra.mxu1 %v1932_v47 }
  0x55   : > { %1669 = vmatprep.subr.bf16.mxu0 %v1933_v48  ;;  %1733 = vmatprep.subr.bf16.mxu1 %v1934_v49 }
  0x58   : > { %1670 = vmatpush3.bf16.msra.mxu0 %v1935_v50  ;;  %1734 = vmatpush3.bf16.msra.mxu1 %v1936_v52 }
  0x59   : > { %1671 = vmatprep.subr.bf16.mxu0 %v1937_v53  ;;  %1735 = vmatprep.subr.bf16.mxu1 %v1938_v54 }
  0x5a   : > { %1552 = vmatmul.mubr.msk.bf16.gmra.mrb[12].mxu0 %vm346_vm0, %v281_v51  ;;  %1569 = vmatmul.mubr.msk.bf16.gmra.mrb[12].mxu1 %vm346_vm0, %v281_v51 }
  0x5b   : > { %443 = vmatprep.mubr.bf16.mxu0 %v2068_v0  ;;  %698 = vmatprep.mubr.bf16.mxu1 %v2068_v0 }
  0x5c   : > { %1672 = vmatpush3.bf16.msra.mxu0 %v1939_v56  ;;  %1736 = vmatpush3.bf16.msra.mxu1 %v1940_v57 }
  0x5d   : > { %1673 = vmatprep.subr.bf16.mxu0 %v1941_v6  ;;  %1737 = vmatprep.subr.bf16.mxu1 %v1942_v7 }
  0x60   : > { %1674 = vmatpush3.bf16.msra.mxu0 %v1943_v8 }
  0x62   : > { %1553 = vmatmul.mubr.msk.bf16.gmra.mrb[16].mxu0 %vm346_vm0, %v282_v59  ;;  %1570 = vmatmul.mubr.msk.bf16.gmra.mrb[16].mxu1 %vm346_vm0, %v282_v59 }
  0x63   : > { %453 = vmatprep.mubr.bf16.mxu0 %v2068_v0  ;;  %708 = vmatprep.mubr.bf16.mxu1 %v2068_v0 }
  0x6a   : > { %1554 = vmatmul.mubr.msk.bf16.gmra.mrb[20].mxu0 %vm346_vm0, %v283_v62  ;;  %1571 = vmatmul.mubr.msk.bf16.gmra.mrb[20].mxu1 %vm346_vm0, %v283_v62 }
  0x6b   : > { %463 = vmatprep.mubr.bf16.mxu0 %v2068_v0  ;;  %718 = vmatprep.mubr.bf16.mxu1 %v2068_v0 }
  0x72   : > { %1555 = vmatmul.mubr.msk.bf16.gmra.mrb[24].mxu0 %vm346_vm0, %v284_v2  ;;  %1572 = vmatmul.mubr.msk.bf16.gmra.mrb[24].mxu1 %vm346_vm0, %v284_v2 }
  0x73   : > { %473 = vmatprep.mubr.bf16.mxu0 %v2068_v0  ;;  %728 = vmatprep.mubr.bf16.mxu1 %v2068_v0  ;;  %v1944_v0 = vld [vmem:[%s2538_s3 + $0x38] sm:$0xff]  }
  0x74   : > { %1738 = vmatpush3.bf16.msra.mxu1 %v1944_v0 }
  0x7a   : > { %1556 = vmatmul.mubr.msk.bf16.gmra.mrb[28].mxu0 %vm346_vm0, %v285_v5  ;;  %1573 = vmatmul.mubr.msk.bf16.gmra.mrb[28].mxu1 %vm346_vm0, %v285_v5 }
 0x115   : > { %v405_v19 = vpop.f32.mrb[0].mxu0  ;;  %v660_v20 = vpop.f32.mrb[0].mxu1 }
 0x116   : > { %v406_v21 = vadd.f32 %v405_v19, %v2323_v15  ;;  %v661_v22 = vadd.f32 %v660_v20, %v2325_v16  ;;  %v407_v23 = vpop.f32.mrb[1].mxu0  ;;  %v662_v24 = vpop.f32.mrb[1].mxu1 }
 0x117   : > { %v408_v25 = vadd.f32 %v407_v23, %v2327_v17  ;;  %v663_v26 = vadd.f32 %v662_v24, %v2329_v18  ;;  %v409_v27 = vpop.f32.mrb[2].mxu0  ;;  %v664_v28 = vpop.f32.mrb[2].mxu1 }
 0x118   : > { %v410_v29 = vadd.f32 %v409_v27, %v2323_v15  ;;  %v665_v30 = vadd.f32 %v664_v28, %v2325_v16  ;;  %v411_v31 = vpop.f32.mrb[3].mxu0  ;;  %v666_v32 = vpop.f32.mrb[3].mxu1  ;;  %v484_v35 = vmax.f32 %v406_v21, 0.0  ;;  %v739_v36 = vmax.f32 %v661_v22, 0.0 }
 0x119   : > { %v412_v33 = vadd.f32 %v411_v31, %v2327_v17  ;;  %v667_v34 = vadd.f32 %v666_v32, %v2329_v18  ;;  %v485_v39 = vmax.f32 %v408_v25, 0.0  ;;  %v740_v40 = vmax.f32 %v663_v26, 0.0 }
 0x11a   : > { %v486_v37 = vmax.f32 %v410_v29, 0.0  ;;  %v741_v38 = vmax.f32 %v665_v30, 0.0 }
 0x11b   : > { %v487_v41 = vmax.f32 %v412_v33, 0.0  ;;  %v742_v42 = vmax.f32 %v667_v34, 0.0 }
 0x11c   : > { %v516_v43 = vpack.c.bf16 %v486_v37, %v484_v35  ;;  %v771_v44 = vpack.c.bf16 %v741_v38, %v739_v36 }
 0x11d   : > { %v517_v45 = vpack.c.bf16 %v487_v41, %v485_v39  ;;  %v772_v46 = vpack.c.bf16 %v742_v42, %v740_v40  ;;  %v415_v47 = vpop.f32.mrb[4].mxu0  ;;  %v670_v48 = vpop.f32.mrb[4].mxu1 }
 0x11e   : > { %v416_v49 = vadd.f32 %v415_v47, %v2323_v15  ;;  %v671_v50 = vadd.f32 %v670_v48, %v2325_v16  ;;  %v417_v51 = vpop.f32.mrb[5].mxu0  ;;  %v672_v52 = vpop.f32.mrb[5].mxu1 }
 0x11f   : > { %v418_v53 = vadd.f32 %v417_v51, %v2327_v17  ;;  %v673_v54 = vadd.f32 %v672_v52, %v2329_v18  ;;  %v419_v55 = vpop.f32.mrb[6].mxu0  ;;  %v674_v56 = vpop.f32.mrb[6].mxu1  ;;  %948 = vmatprep.mubr.bf16.mxu0 %v772_v46  ;;  %1141 = vmatprep.mubr.bf16.mxu1 %v517_v45 }
 0x120   : > { %v420_v57 = vadd.f32 %v419_v55, %v2323_v15  ;;  %v675_v58 = vadd.f32 %v674_v56, %v2325_v16  ;;  %v421_v59 = vpop.f32.mrb[7].mxu0  ;;  %v676_v60 = vpop.f32.mrb[7].mxu1  ;;  %949 = vmatmul.mubr.bf16.vlgmr.msra.gmra.mrb[32].mxu0 %v771_v44  ;;  %1142 = vmatmul.mubr.bf16.vlgmr.msra.gmra.mrb[32].mxu1 %v516_v43  ;;  %v488_v63 = vmax.f32 %v416_v49, 0.0  ;;  %v743_v1 = vmax.f32 %v671_v50, 0.0 }
 0x121   : > { %v422_v61 = vadd.f32 %v421_v59, %v2327_v17  ;;  %v677_v62 = vadd.f32 %v676_v60, %v2329_v18  ;;  %v489_v4 = vmax.f32 %v418_v53, 0.0  ;;  %v744_v5 = vmax.f32 %v673_v54, 0.0 }
 0x122   : > { %v490_v2 = vmax.f32 %v420_v57, 0.0  ;;  %v745_v3 = vmax.f32 %v675_v58, 0.0 }
 0x123   : > { %v491_v6 = vmax.f32 %v422_v61, 0.0  ;;  %v746_v7 = vmax.f32 %v677_v62, 0.0 }
 0x124   : > { %v518_v8 = vpack.c.bf16 %v490_v2, %v488_v63  ;;  %v773_v0 = vpack.c.bf16 %v745_v3, %v743_v1 }
 0x125   : > { %v519_v9 = vpack.c.bf16 %v491_v6, %v489_v4  ;;  %v774_v10 = vpack.c.bf16 %v746_v7, %v744_v5  ;;  %v425_v11 = vpop.f32.mrb[8].mxu0  ;;  %v680_v12 = vpop.f32.mrb[8].mxu1 }
 0x126   : > { %v426_v13 = vadd.f32 %v425_v11, %v2323_v15  ;;  %v681_v14 = vadd.f32 %v680_v12, %v2325_v16  ;;  %v427_v19 = vpop.f32.mrb[9].mxu0  ;;  %v682_v20 = vpop.f32.mrb[9].mxu1 }
 0x127   : > { %v428_v21 = vadd.f32 %v427_v19, %v2327_v17  ;;  %v683_v22 = vadd.f32 %v682_v20, %v2329_v18  ;;  %v429_v23 = vpop.f32.mrb[10].mxu0  ;;  %v684_v24 = vpop.f32.mrb[10].mxu1  ;;  %956 = vmatprep.mubr.bf16.mxu0 %v774_v10  ;;  %1149 = vmatprep.mubr.bf16.mxu1 %v519_v9 }
 0x128   : > { %v430_v25 = vadd.f32 %v429_v23, %v2323_v15  ;;  %v685_v26 = vadd.f32 %v684_v24, %v2325_v16  ;;  %v431_v27 = vpop.f32.mrb[11].mxu0  ;;  %v686_v28 = vpop.f32.mrb[11].mxu1  ;;  %957 = vmatmul.mubr.bf16.gmra.mrb[36].mxu0 %v773_v0  ;;  %1150 = vmatmul.mubr.bf16.gmra.mrb[36].mxu1 %v518_v8  ;;  %v492_v31 = vmax.f32 %v426_v13, 0.0  ;;  %v747_v32 = vmax.f32 %v681_v14, 0.0 }
 0x129   : > { %v432_v29 = vadd.f32 %v431_v27, %v2327_v17  ;;  %v687_v30 = vadd.f32 %v686_v28, %v2329_v18  ;;  %v493_v35 = vmax.f32 %v428_v21, 0.0  ;;  %v748_v36 = vmax.f32 %v683_v22, 0.0 }
 0x12a   : > { %v494_v33 = vmax.f32 %v430_v25, 0.0  ;;  %v749_v34 = vmax.f32 %v685_v26, 0.0 }
 0x12b   : > { %v495_v37 = vmax.f32 %v432_v29, 0.0  ;;  %v750_v38 = vmax.f32 %v687_v30, 0.0 }
 0x12c   : > { %v520_v39 = vpack.c.bf16 %v494_v33, %v492_v31  ;;  %v775_v40 = vpack.c.bf16 %v749_v34, %v747_v32 }
 0x12d   : > { %v521_v41 = vpack.c.bf16 %v495_v37, %v493_v35  ;;  %v776_v42 = vpack.c.bf16 %v750_v38, %v748_v36  ;;  %v435_v43 = vpop.f32.mrb[12].mxu0  ;;  %v690_v44 = vpop.f32.mrb[12].mxu1 }
 0x12e   : > { %v436_v45 = vadd.f32 %v435_v43, %v2323_v15  ;;  %v691_v46 = vadd.f32 %v690_v44, %v2325_v16  ;;  %v437_v47 = vpop.f32.mrb[13].mxu0  ;;  %v692_v48 = vpop.f32.mrb[13].mxu1 }
 0x12f   : > { %v438_v49 = vadd.f32 %v437_v47, %v2327_v17  ;;  %v693_v50 = vadd.f32 %v692_v48, %v2329_v18  ;;  %v439_v51 = vpop.f32.mrb[14].mxu0  ;;  %v694_v52 = vpop.f32.mrb[14].mxu1  ;;  %964 = vmatprep.mubr.bf16.mxu0 %v776_v42  ;;  %1157 = vmatprep.mubr.bf16.mxu1 %v521_v41 }
 0x130   : > { %v440_v53 = vadd.f32 %v439_v51, %v2323_v15  ;;  %v695_v54 = vadd.f32 %v694_v52, %v2325_v16  ;;  %v441_v55 = vpop.f32.mrb[15].mxu0  ;;  %v696_v56 = vpop.f32.mrb[15].mxu1  ;;  %965 = vmatmul.mubr.bf16.gmra.mrb[40].mxu0 %v775_v40  ;;  %1158 = vmatmul.mubr.bf16.gmra.mrb[40].mxu1 %v520_v39  ;;  %v496_v59 = vmax.f32 %v436_v45, 0.0  ;;  %v751_v60 = vmax.f32 %v691_v46, 0.0 }
 0x131   : > { %v442_v57 = vadd.f32 %v441_v55, %v2327_v17  ;;  %v697_v58 = vadd.f32 %v696_v56, %v2329_v18  ;;  %v497_v63 = vmax.f32 %v438_v49, 0.0  ;;  %v752_v1 = vmax.f32 %v693_v50, 0.0 }
 0x132   : > { %v498_v61 = vmax.f32 %v440_v53, 0.0  ;;  %v753_v62 = vmax.f32 %v695_v54, 0.0 }
 0x133   : > { %v499_v2 = vmax.f32 %v442_v57, 0.0  ;;  %v754_v3 = vmax.f32 %v697_v58, 0.0 }
 0x134   : > { %v522_v4 = vpack.c.bf16 %v498_v61, %v496_v59  ;;  %v777_v5 = vpack.c.bf16 %v753_v62, %v751_v60 }
 0x135   : > { %v523_v6 = vpack.c.bf16 %v499_v2, %v497_v63  ;;  %v778_v7 = vpack.c.bf16 %v754_v3, %v752_v1  ;;  %v445_v8 = vpop.f32.mrb[16].mxu0  ;;  %v700_v0 = vpop.f32.mrb[16].mxu1 }
 0x136   : > { %v446_v9 = vadd.f32 %v445_v8, %v2323_v15  ;;  %v701_v10 = vadd.f32 %v700_v0, %v2325_v16  ;;  %v447_v11 = vpop.f32.mrb[17].mxu0  ;;  %v702_v12 = vpop.f32.mrb[17].mxu1 }
 0x137   : > { %v448_v13 = vadd.f32 %v447_v11, %v2327_v17  ;;  %v703_v14 = vadd.f32 %v702_v12, %v2329_v18  ;;  %v449_v19 = vpop.f32.mrb[18].mxu0  ;;  %v704_v20 = vpop.f32.mrb[18].mxu1  ;;  %972 = vmatprep.mubr.bf16.mxu0 %v778_v7  ;;  %1165 = vmatprep.mubr.bf16.mxu1 %v523_v6 }
 0x138   : > { %v450_v21 = vadd.f32 %v449_v19, %v2323_v15  ;;  %v705_v22 = vadd.f32 %v704_v20, %v2325_v16  ;;  %v451_v23 = vpop.f32.mrb[19].mxu0  ;;  %v706_v24 = vpop.f32.mrb[19].mxu1  ;;  %973 = vmatmul.mubr.bf16.gmra.mrb[44].mxu0 %v777_v5  ;;  %1166 = vmatmul.mubr.bf16.gmra.mrb[44].mxu1 %v522_v4  ;;  %v500_v27 = vmax.f32 %v446_v9, 0.0  ;;  %v755_v28 = vmax.f32 %v701_v10, 0.0 }
 0x139   : > { %v452_v25 = vadd.f32 %v451_v23, %v2327_v17  ;;  %v707_v26 = vadd.f32 %v706_v24, %v2329_v18  ;;  %v501_v31 = vmax.f32 %v448_v13, 0.0  ;;  %v756_v32 = vmax.f32 %v703_v14, 0.0 }
 0x13a   : > { %v502_v29 = vmax.f32 %v450_v21, 0.0  ;;  %v757_v30 = vmax.f32 %v705_v22, 0.0 }
 0x13b   : > { %v503_v33 = vmax.f32 %v452_v25, 0.0  ;;  %v758_v34 = vmax.f32 %v707_v26, 0.0 }
 0x13c   : > { %v524_v35 = vpack.c.bf16 %v502_v29, %v500_v27  ;;  %v779_v36 = vpack.c.bf16 %v757_v30, %v755_v28 }
 0x13d   : > { %v525_v37 = vpack.c.bf16 %v503_v33, %v501_v31  ;;  %v780_v38 = vpack.c.bf16 %v758_v34, %v756_v32  ;;  %v455_v39 = vpop.f32.mrb[20].mxu0  ;;  %v710_v40 = vpop.f32.mrb[20].mxu1 }
 0x13e   : > { %v456_v41 = vadd.f32 %v455_v39, %v2323_v15  ;;  %v711_v42 = vadd.f32 %v710_v40, %v2325_v16  ;;  %v457_v43 = vpop.f32.mrb[21].mxu0  ;;  %v712_v44 = vpop.f32.mrb[21].mxu1 }
 0x13f   : > { %v458_v45 = vadd.f32 %v457_v43, %v2327_v17  ;;  %v713_v46 = vadd.f32 %v712_v44, %v2329_v18  ;;  %v459_v47 = vpop.f32.mrb[22].mxu0  ;;  %v714_v48 = vpop.f32.mrb[22].mxu1  ;;  %980 = vmatprep.mubr.bf16.mxu0 %v780_v38  ;;  %1173 = vmatprep.mubr.bf16.mxu1 %v525_v37 }
 0x140   : > { %v460_v49 = vadd.f32 %v459_v47, %v2323_v15  ;;  %v715_v50 = vadd.f32 %v714_v48, %v2325_v16  ;;  %v461_v51 = vpop.f32.mrb[23].mxu0  ;;  %v716_v52 = vpop.f32.mrb[23].mxu1  ;;  %981 = vmatmul.mubr.bf16.gmra.mrb[48].mxu0 %v779_v36  ;;  %1174 = vmatmul.mubr.bf16.gmra.mrb[48].mxu1 %v524_v35  ;;  %v504_v55 = vmax.f32 %v456_v41, 0.0  ;;  %v759_v56 = vmax.f32 %v711_v42, 0.0 }
 0x141   : > { %v462_v53 = vadd.f32 %v461_v51, %v2327_v17  ;;  %v717_v54 = vadd.f32 %v716_v52, %v2329_v18  ;;  %v505_v59 = vmax.f32 %v458_v45, 0.0  ;;  %v760_v60 = vmax.f32 %v713_v46, 0.0 }
 0x142   : > { %v506_v57 = vmax.f32 %v460_v49, 0.0  ;;  %v761_v58 = vmax.f32 %v715_v50, 0.0 }
 0x143   : > { %v507_v61 = vmax.f32 %v462_v53, 0.0  ;;  %v762_v62 = vmax.f32 %v717_v54, 0.0 }
 0x144   : > { %v526_v63 = vpack.c.bf16 %v506_v57, %v504_v55  ;;  %v781_v1 = vpack.c.bf16 %v761_v58, %v759_v56 }
 0x145   : > { %v527_v2 = vpack.c.bf16 %v507_v61, %v505_v59  ;;  %v782_v3 = vpack.c.bf16 %v762_v62, %v760_v60  ;;  %v465_v4 = vpop.f32.mrb[24].mxu0  ;;  %v720_v5 = vpop.f32.mrb[24].mxu1 }
 0x146   : > { %v466_v6 = vadd.f32 %v465_v4, %v2323_v15  ;;  %v721_v7 = vadd.f32 %v720_v5, %v2325_v16  ;;  %v467_v8 = vpop.f32.mrb[25].mxu0  ;;  %v722_v0 = vpop.f32.mrb[25].mxu1  ;;  %v2399_v4 = vld [vmem:[%s2539_s4] ss:$0 sm:$0xff] }
 0x147   : > { %v468_v9 = vadd.f32 %v467_v8, %v2327_v17  ;;  %v723_v10 = vadd.f32 %v722_v0, %v2329_v18  ;;  %v469_v11 = vpop.f32.mrb[26].mxu0  ;;  %v724_v12 = vpop.f32.mrb[26].mxu1  ;;  %988 = vmatprep.mubr.bf16.mxu0 %v782_v3  ;;  %1181 = vmatprep.mubr.bf16.mxu1 %v527_v2 }
 0x148   : > { %v470_v13 = vadd.f32 %v469_v11, %v2323_v15  ;;  %v725_v14 = vadd.f32 %v724_v12, %v2325_v16  ;;  %v471_v19 = vpop.f32.mrb[27].mxu0  ;;  %v726_v20 = vpop.f32.mrb[27].mxu1  ;;  %989 = vmatmul.mubr.bf16.gmra.mrb[52].mxu0 %v781_v1  ;;  %1182 = vmatmul.mubr.bf16.gmra.mrb[52].mxu1 %v526_v63  ;;  %v508_v23 = vmax.f32 %v466_v6, 0.0  ;;  %v763_v24 = vmax.f32 %v721_v7, 0.0 }
 0x149   : > { %v472_v21 = vadd.f32 %v471_v19, %v2327_v17  ;;  %v727_v22 = vadd.f32 %v726_v20, %v2329_v18  ;;  %v509_v27 = vmax.f32 %v468_v9, 0.0  ;;  %v764_v28 = vmax.f32 %v723_v10, 0.0 }
 0x14a   : > { %v510_v25 = vmax.f32 %v470_v13, 0.0  ;;  %v765_v26 = vmax.f32 %v725_v14, 0.0 }
 0x14b   : > { %v511_v29 = vmax.f32 %v472_v21, 0.0  ;;  %v766_v30 = vmax.f32 %v727_v22, 0.0 }
 0x14c   : > { %v528_v31 = vpack.c.bf16 %v510_v25, %v508_v23  ;;  %v783_v32 = vpack.c.bf16 %v765_v26, %v763_v24 }
 0x14d   : > { %v529_v33 = vpack.c.bf16 %v511_v29, %v509_v27  ;;  %v784_v34 = vpack.c.bf16 %v766_v30, %v764_v28  ;;  %v475_v35 = vpop.f32.mrb[28].mxu0  ;;  %v730_v36 = vpop.f32.mrb[28].mxu1 }
 0x14e   : > { %v476_v37 = vadd.f32 %v475_v35, %v2323_v15  ;;  %v731_v38 = vadd.f32 %v730_v36, %v2325_v16  ;;  %v477_v39 = vpop.f32.mrb[29].mxu0  ;;  %v732_v40 = vpop.f32.mrb[29].mxu1 }
 0x14f   : > { %v478_v41 = vadd.f32 %v477_v39, %v2327_v17  ;;  %v733_v42 = vadd.f32 %v732_v40, %v2329_v18  ;;  %v479_v43 = vpop.f32.mrb[30].mxu0  ;;  %v734_v44 = vpop.f32.mrb[30].mxu1  ;;  %996 = vmatprep.mubr.bf16.mxu0 %v784_v34  ;;  %1189 = vmatprep.mubr.bf16.mxu1 %v529_v33 }
 0x150   : > { %v480_v45 = vadd.f32 %v479_v43, %v2323_v15  ;;  %v735_v46 = vadd.f32 %v734_v44, %v2325_v16  ;;  %v481_v47 = vpop.f32.mrb[31].mxu0  ;;  %v736_v48 = vpop.f32.mrb[31].mxu1  ;;  %997 = vmatmul.mubr.bf16.gmra.mrb[56].mxu0 %v783_v32  ;;  %1190 = vmatmul.mubr.bf16.gmra.mrb[56].mxu1 %v528_v31  ;;  %v512_v51 = vmax.f32 %v476_v37, 0.0  ;;  %v767_v52 = vmax.f32 %v731_v38, 0.0 }
 0x151   : > { %v482_v49 = vadd.f32 %v481_v47, %v2327_v17  ;;  %v737_v50 = vadd.f32 %v736_v48, %v2329_v18  ;;  %v513_v55 = vmax.f32 %v478_v41, 0.0  ;;  %v768_v56 = vmax.f32 %v733_v42, 0.0 }
 0x152   : > { %v514_v53 = vmax.f32 %v480_v45, 0.0  ;;  %v769_v54 = vmax.f32 %v735_v46, 0.0 }
 0x153   : > { %v515_v57 = vmax.f32 %v482_v49, 0.0  ;;  %v770_v58 = vmax.f32 %v737_v50, 0.0 }
 0x154   : > { %v530_v15 = vpack.c.bf16 %v514_v53, %v512_v51  ;;  %v785_v59 = vpack.c.bf16 %v769_v54, %v767_v52 }
 0x155   : > { %v531_v16 = vpack.c.bf16 %v515_v57, %v513_v55  ;;  %v786_v60 = vpack.c.bf16 %v770_v58, %v768_v56 }
 0x157   : > { %1004 = vmatprep.mubr.bf16.mxu0 %v786_v60  ;;  %1197 = vmatprep.mubr.bf16.mxu1 %v531_v16 }
 0x158   : > { %1005 = vmatmul.mubr.bf16.gmra.mrb[60].mxu0 %v785_v59  ;;  %1198 = vmatmul.mubr.bf16.gmra.mrb[60].mxu1 %v530_v15 }
 0x1f3   : > { %v1675_v17 = vpop.f32.mrb[32].mxu0  ;;  %v1739_v18 = vpop.f32.mrb[32].mxu1 }
 0x1f4   : > { %v1676_v61 = vpop.f32.mrb[33].mxu0  ;;  %v1740_v62 = vpop.f32.mrb[33].mxu1 }
 0x1f5   : > { %v1677_v63 = vadd.f32 %v1676_v61, %v1675_v17  ;;  %v1741_v1 = vadd.f32 %v1740_v62, %v1739_v18  ;;  %v1678_v2 = vpop.f32.mrb[34].mxu0  ;;  %v1742_v3 = vpop.f32.mrb[34].mxu1 }
 0x1f6   : > { %v1679_v5 = vpop.f32.mrb[35].mxu0  ;;  %v1743_v6 = vpop.f32.mrb[35].mxu1 }
 0x1f7   : > { %v1144_v7 = vadd.f32 %v1741_v1, %v1677_v63  ;;  %v1680_v8 = vadd.f32 %v1679_v5, %v1678_v2  ;;  %v1744_v0 = vadd.f32 %v1743_v6, %v1742_v3 }
 0x1f9   : > { %v1213_v9 = vadd.f32 %v2399_v4, %v1144_v7  ;;  %v1147_v10 = vadd.f32 %v1744_v0, %v1680_v8 }
 0x1fb   : > { %1229 = vst [vmem:[%s2402_s18] sm:$0xff] %v1213_v9  ;;  %v1214_v11 = vadd.f32 %v2399_v4, %v1147_v10  ;;  %v1681_v12 = vpop.f32.mrb[36].mxu0  ;;  %v1745_v13 = vpop.f32.mrb[36].mxu1 }
 0x1fc   : > { %v1682_v14 = vpop.f32.mrb[37].mxu0  ;;  %v1746_v19 = vpop.f32.mrb[37].mxu1 }
 0x1fd   : > { %1230 = vst [vmem:[%s2402_s18 + $0x8] sm:$0xff] %v1214_v11  ;;  %v1683_v20 = vadd.f32 %v1682_v14, %v1681_v12  ;;  %v1747_v21 = vadd.f32 %v1746_v19, %v1745_v13  ;;  %v1684_v22 = vpop.f32.mrb[38].mxu0  ;;  %v1748_v23 = vpop.f32.mrb[38].mxu1 }
 0x1fe   : > { %v1685_v24 = vpop.f32.mrb[39].mxu0  ;;  %v1749_v25 = vpop.f32.mrb[39].mxu1 }
 0x1ff   : > { %v1152_v26 = vadd.f32 %v1747_v21, %v1683_v20  ;;  %v1686_v27 = vadd.f32 %v1685_v24, %v1684_v22  ;;  %v1750_v28 = vadd.f32 %v1749_v25, %v1748_v23 }
 0x201   : > { %v1215_v29 = vadd.f32 %v2399_v4, %v1152_v26  ;;  %v1155_v30 = vadd.f32 %v1750_v28, %v1686_v27 }
 0x203   : > { %1231 = vst [vmem:[%s2402_s18 + $0x10] sm:$0xff] %v1215_v29  ;;  %v1216_v31 = vadd.f32 %v2399_v4, %v1155_v30  ;;  %v1687_v32 = vpop.f32.mrb[40].mxu0  ;;  %v1751_v33 = vpop.f32.mrb[40].mxu1 }
 0x204   : > { %v1688_v34 = vpop.f32.mrb[41].mxu0  ;;  %v1752_v35 = vpop.f32.mrb[41].mxu1 }
 0x205   : > { %1232 = vst [vmem:[%s2402_s18 + $0x18] sm:$0xff] %v1216_v31  ;;  %v1689_v36 = vadd.f32 %v1688_v34, %v1687_v32  ;;  %v1753_v37 = vadd.f32 %v1752_v35, %v1751_v33  ;;  %v1690_v38 = vpop.f32.mrb[42].mxu0  ;;  %v1754_v39 = vpop.f32.mrb[42].mxu1 }
 0x206   : > { %v1691_v40 = vpop.f32.mrb[43].mxu0  ;;  %v1755_v41 = vpop.f32.mrb[43].mxu1 }
 0x207   : > { %v1160_v42 = vadd.f32 %v1753_v37, %v1689_v36  ;;  %v1692_v43 = vadd.f32 %v1691_v40, %v1690_v38  ;;  %v1756_v44 = vadd.f32 %v1755_v41, %v1754_v39 }
 0x209   : > { %v1217_v45 = vadd.f32 %v2399_v4, %v1160_v42  ;;  %v1163_v46 = vadd.f32 %v1756_v44, %v1692_v43 }
 0x20b   : > { %1233 = vst [vmem:[%s2402_s18 + $0x20] sm:$0xff] %v1217_v45  ;;  %v1218_v47 = vadd.f32 %v2399_v4, %v1163_v46  ;;  %v1693_v48 = vpop.f32.mrb[44].mxu0  ;;  %v1757_v49 = vpop.f32.mrb[44].mxu1 }
 0x20c   : > { %v1694_v50 = vpop.f32.mrb[45].mxu0  ;;  %v1758_v51 = vpop.f32.mrb[45].mxu1 }
 0x20d   : > { %1234 = vst [vmem:[%s2402_s18 + $0x28] sm:$0xff] %v1218_v47  ;;  %v1695_v52 = vadd.f32 %v1694_v50, %v1693_v48  ;;  %v1759_v53 = vadd.f32 %v1758_v51, %v1757_v49  ;;  %v1696_v54 = vpop.f32.mrb[46].mxu0  ;;  %v1760_v55 = vpop.f32.mrb[46].mxu1 }
 0x20e   : > { %v1697_v56 = vpop.f32.mrb[47].mxu0  ;;  %v1761_v57 = vpop.f32.mrb[47].mxu1 }
 0x20f   : > { %v1168_v58 = vadd.f32 %v1759_v53, %v1695_v52  ;;  %v1698_v15 = vadd.f32 %v1697_v56, %v1696_v54  ;;  %v1762_v59 = vadd.f32 %v1761_v57, %v1760_v55 }
 0x211   : > { %v1219_v16 = vadd.f32 %v2399_v4, %v1168_v58  ;;  %v1171_v60 = vadd.f32 %v1762_v59, %v1698_v15 }
 0x213   : > { %1235 = vst [vmem:[%s2402_s18 + $0x30] sm:$0xff] %v1219_v16  ;;  %v1220_v17 = vadd.f32 %v2399_v4, %v1171_v60  ;;  %v1699_v18 = vpop.f32.mrb[48].mxu0  ;;  %v1763_v61 = vpop.f32.mrb[48].mxu1 }
 0x214   : > { %v1700_v62 = vpop.f32.mrb[49].mxu0  ;;  %v1764_v63 = vpop.f32.mrb[49].mxu1 }
 0x215   : > { %1236 = vst [vmem:[%s2402_s18 + $0x38] sm:$0xff] %v1220_v17  ;;  %v1701_v1 = vadd.f32 %v1700_v62, %v1699_v18  ;;  %v1765_v2 = vadd.f32 %v1764_v63, %v1763_v61  ;;  %v1702_v3 = vpop.f32.mrb[50].mxu0  ;;  %v1766_v5 = vpop.f32.mrb[50].mxu1 }
 0x216   : > { %v1703_v6 = vpop.f32.mrb[51].mxu0  ;;  %v1767_v7 = vpop.f32.mrb[51].mxu1 }
 0x217   : > { %v1176_v8 = vadd.f32 %v1765_v2, %v1701_v1  ;;  %v1704_v0 = vadd.f32 %v1703_v6, %v1702_v3  ;;  %v1768_v9 = vadd.f32 %v1767_v7, %v1766_v5 }
 0x219   : > { %v1221_v10 = vadd.f32 %v2399_v4, %v1176_v8  ;;  %v1179_v11 = vadd.f32 %v1768_v9, %v1704_v0 }
 0x21b   : > { %1237 = vst [vmem:[%s2402_s18 + $0x40] sm:$0xff] %v1221_v10  ;;  %v1222_v12 = vadd.f32 %v2399_v4, %v1179_v11  ;;  %v1705_v13 = vpop.f32.mrb[52].mxu0  ;;  %v1769_v14 = vpop.f32.mrb[52].mxu1 }
 0x21c   : > { %v1706_v19 = vpop.f32.mrb[53].mxu0  ;;  %v1770_v20 = vpop.f32.mrb[53].mxu1 }
 0x21d   : > { %1238 = vst [vmem:[%s2402_s18 + $0x48] sm:$0xff] %v1222_v12  ;;  %v1707_v21 = vadd.f32 %v1706_v19, %v1705_v13  ;;  %v1771_v22 = vadd.f32 %v1770_v20, %v1769_v14  ;;  %v1708_v23 = vpop.f32.mrb[54].mxu0  ;;  %v1772_v24 = vpop.f32.mrb[54].mxu1 }
 0x21e   : > { %v1709_v25 = vpop.f32.mrb[55].mxu0  ;;  %v1773_v26 = vpop.f32.mrb[55].mxu1 }
 0x21f   : > { %v1184_v27 = vadd.f32 %v1771_v22, %v1707_v21  ;;  %v1710_v28 = vadd.f32 %v1709_v25, %v1708_v23  ;;  %v1774_v29 = vadd.f32 %v1773_v26, %v1772_v24 }
 0x221   : > { %v1223_v30 = vadd.f32 %v2399_v4, %v1184_v27  ;;  %v1187_v31 = vadd.f32 %v1774_v29, %v1710_v28 }
 0x223   : > { %1239 = vst [vmem:[%s2402_s18 + $0x50] sm:$0xff] %v1223_v30  ;;  %v1224_v32 = vadd.f32 %v2399_v4, %v1187_v31  ;;  %v1711_v33 = vpop.f32.mrb[56].mxu0  ;;  %v1775_v34 = vpop.f32.mrb[56].mxu1 }
 0x224   : > { %v1712_v35 = vpop.f32.mrb[57].mxu0  ;;  %v1776_v36 = vpop.f32.mrb[57].mxu1 }
 0x225   : > { %1240 = vst [vmem:[%s2402_s18 + $0x58] sm:$0xff] %v1224_v32  ;;  %v1713_v37 = vadd.f32 %v1712_v35, %v1711_v33  ;;  %v1777_v38 = vadd.f32 %v1776_v36, %v1775_v34  ;;  %v1714_v39 = vpop.f32.mrb[58].mxu0  ;;  %v1778_v40 = vpop.f32.mrb[58].mxu1 }
 0x226   : > { %v1715_v41 = vpop.f32.mrb[59].mxu0  ;;  %v1779_v42 = vpop.f32.mrb[59].mxu1 }
 0x227   : > { %v1192_v43 = vadd.f32 %v1777_v38, %v1713_v37  ;;  %v1716_v44 = vadd.f32 %v1715_v41, %v1714_v39  ;;  %v1780_v45 = vadd.f32 %v1779_v42, %v1778_v40 }
 0x229   : > { %v1225_v46 = vadd.f32 %v2399_v4, %v1192_v43  ;;  %v1195_v47 = vadd.f32 %v1780_v45, %v1716_v44 }
 0x22b   : > { %1241 = vst [vmem:[%s2402_s18 + $0x60] sm:$0xff] %v1225_v46  ;;  %v1226_v48 = vadd.f32 %v2399_v4, %v1195_v47  ;;  %v1717_v49 = vpop.f32.mrb[60].mxu0  ;;  %v1781_v50 = vpop.f32.mrb[60].mxu1 }
 0x22c   : > { %v1718_v51 = vpop.f32.mrb[61].mxu0  ;;  %v1782_v52 = vpop.f32.mrb[61].mxu1 }
 0x22d   : > { %1242 = vst [vmem:[%s2402_s18 + $0x68] sm:$0xff] %v1226_v48  ;;  %v1719_v53 = vadd.f32 %v1718_v51, %v1717_v49  ;;  %v1783_v54 = vadd.f32 %v1782_v52, %v1781_v50  ;;  %v1720_v55 = vpop.f32.mrb[62].mxu0  ;;  %v1784_v56 = vpop.f32.mrb[62].mxu1 }
 0x22e   : > { %v1721_v57 = vpop.f32.mrb[63].mxu0  ;;  %v1785_v58 = vpop.f32.mrb[63].mxu1 }
 0x22f   : > { %v1200_v15 = vadd.f32 %v1783_v54, %v1719_v53  ;;  %v1722_v59 = vadd.f32 %v1721_v57, %v1720_v55  ;;  %v1786_v16 = vadd.f32 %v1785_v58, %v1784_v56  ;;  %1251 = sbr.rel (!%p2549_p6) target bundleno = 615 (0x267), region = 48 }
 0x231   : > { %v1227_v60 = vadd.f32 %v2399_v4, %v1200_v15  ;;  %v1203_v17 = vadd.f32 %v1786_v16, %v1722_v59 }
 0x233   : > { %1243 = vst [vmem:[%s2402_s18 + $0x70] sm:$0xff] %v1227_v60  ;;  %v1228_v18 = vadd.f32 %v2399_v4, %v1203_v17 }
 0x235   : > { %1244 = vst [vmem:[%s2402_s18 + $0x78] sm:$0xff] %v1228_v18 }
 0x236   : > { %s2557_s8 = smov (!%p1254_p7, %s1253_s8), 16 }
 0x237   : > { %s1641_s13 = sshll.u32 %s2557_s8, 7 }
 0x238   : > { %p1644_p9 = scmp.eq.s32.totalorder %s1641_s13, 0 }
 0x239   : > { %s2448_s14 = sshrl.u32 (!%p1644_p9), %s2557_s8, 4 }
 0x23a   : > { %1262 = sbr.rel (%p1644_p9) target bundleno = 615 (0x267), region = 52  ;;  %p1645_p13 = scmp.le.s32.totalorder (!%p1644_p9), %s2448_s14, 0 }
 0x241   : > { %1479 = sbr.rel (%p1645_p13) target bundleno = 594 (0x252), region = 132  ;;  %s2550_s21 = smov (!%p1645_p13), %s2442_s12 }
 0x242   : > { %s2551_s26 = smov (!%p1645_p13), %s2402_s18  ;;  %s2457_s20 = smov (!%p1645_p13), 0  }
 0x243   : > { %s2459_s15 = smov (!%p1645_p13), 0  }
 0x248 LB: >> { %v1354_v4 = vld [vmem:[%s2039_s26] sm:$0xff]  ;;  %v1356_v61 = vld [vmem:[%s2039_s26 + $0x8] sm:$0xff]  ;;  %v1358_v62 = vld [vmem:[%s2039_s26 + $0x10] sm:$0xff]  ;;  %s1386_s16 = sadd.s32 1, %s2043_s20  ;;  %s1348_s15 = sadd.s32 1, %s2047_s15   ;;  %s2047_s15 = sphi %s2459_s15, %s1348_s15   ;;  %s2043_s20 = sphi %s2457_s20, %s2552_s20   ;;  %s2039_s26 = sphi %s2551_s26, %s1391_s26   ;;  %s2035_s21 = sphi %s2550_s21, %s1392_s21  }
 0x249   : >> { %1355 = vst [vmem:[%s2035_s21] sm:$0xff] %v1354_v4  ;;  %1357 = vst [vmem:[%s2035_s21 + $0x8] sm:$0xff] %v1356_v61  ;;  %v1360_v63 = vld [vmem:[%s2039_s26 + $0x18] sm:$0xff]  ;;  %v1362_v1 = vld [vmem:[%s2039_s26 + $0x20] sm:$0xff]  ;;  %p1387_p0 = scmp.ge.s32.totalorder %s1386_s16, %s2448_s14  ;;  %p1347_p1 = scmp.ge.s32.totalorder %s1348_s15, %s2448_s14 }
 0x24a   : >> { %1359 = vst [vmem:[%s2035_s21 + $0x10] sm:$0xff] %v1358_v62  ;;  %v1364_v2 = vld [vmem:[%s2039_s26 + $0x28] sm:$0xff]  ;;  %1361 = vst [vmem:[%s2035_s21 + $0x18] sm:$0xff] %v1360_v63  ;;  %v1366_v3 = vld [vmem:[%s2039_s26 + $0x30] sm:$0xff] }
 0x24b   : >> { %1363 = vst [vmem:[%s2035_s21 + $0x20] sm:$0xff] %v1362_v1  ;;  %1365 = vst [vmem:[%s2035_s21 + $0x28] sm:$0xff] %v1364_v2  ;;  %v1368_v5 = vld [vmem:[%s2039_s26 + $0x38] sm:$0xff]  ;;  %v1370_v6 = vld [vmem:[%s2039_s26 + $0x40] sm:$0xff]  ;;  %s2559_s16 = smov (%p1387_p0, %s1386_s16), 0  ;;  %1350 = sbr.rel (!%p1347_p1) target bundleno = 584 (0x248), region = 138 }
 0x24c   : >> { %1367 = vst [vmem:[%s2035_s21 + $0x30] sm:$0xff] %v1366_v3  ;;  %1369 = vst [vmem:[%s2035_s21 + $0x38] sm:$0xff] %v1368_v5  ;;  %v1372_v7 = vld [vmem:[%s2039_s26 + $0x48] sm:$0xff]  ;;  %v1374_v8 = vld [vmem:[%s2039_s26 + $0x50] sm:$0xff]  ;;  %s1646_s17 = sshll.u32 %s2559_s16, 7  ;;  %s2552_s20 = smov %s2559_s16 }
 0x24d   : >> { %1371 = vst [vmem:[%s2035_s21 + $0x40] sm:$0xff] %v1370_v6  ;;  %v1376_v0 = vld [vmem:[%s2039_s26 + $0x58] sm:$0xff]  ;;  %1373 = vst [vmem:[%s2035_s21 + $0x48] sm:$0xff] %v1372_v7  ;;  %v1378_v9 = vld [vmem:[%s2039_s26 + $0x60] sm:$0xff] }
 0x24e   : >> { %1375 = vst [vmem:[%s2035_s21 + $0x50] sm:$0xff] %v1374_v8  ;;  %1377 = vst [vmem:[%s2035_s21 + $0x58] sm:$0xff] %v1376_v0  ;;  %v1380_v10 = vld [vmem:[%s2039_s26 + $0x68] sm:$0xff]  ;;  %v1382_v11 = vld [vmem:[%s2039_s26 + $0x70] sm:$0xff] }
 0x24f   : >> { %1379 = vst [vmem:[%s2035_s21 + $0x60] sm:$0xff] %v1378_v9  ;;  %1381 = vst [vmem:[%s2035_s21 + $0x68] sm:$0xff] %v1380_v10  ;;  %v1384_v12 = vld [vmem:[%s2039_s26 + $0x78] sm:$0xff]  ;;  %s1391_s26 = scalar_lea.vmem %s2402_s18, %s1646_s17 [#allocation4]  }
 0x250   : >> { %1383 = vst [vmem:[%s2035_s21 + $0x70] sm:$0xff] %v1382_v11  ;;  %1385 = vst [vmem:[%s2035_s21 + $0x78] sm:$0xff] %v1384_v12  ;;  %s1392_s21 = scalar_lea.vmem %s2442_s12, %s1646_s17  }
 0x252 PF: > { %s2517_s29 = sand.u32 15, %s2557_s8   ;;  %s1657_s23 = sshll.u32 %s2448_s14, 7 }
 0x253   : > { %s1397_s24 = scalar_lea.vmem %s2402_s18, %s1657_s23 [#allocation4]   ;;  %s1399_s27 = scalar_lea.vmem %s2442_s12, %s1657_s23  }
 0x254   : > { %p1651_p2 = scmp.le.s32.totalorder %s2517_s29, 0 }
 0x255   : > { %s2049_s28 = smov (!%p1651_p2), %s1399_s27   ;;  %s2053_s30 = smov (!%p1651_p2), %s1397_s24  }
 0x256   : > { %1493 = sbr.rel (%p1651_p2) target bundleno = 615 (0x267), region = 143  ;;  %s2057_s6 = smov (!%p1651_p2), 0  }
 0x257   : > { %s2061_s7 = smov (!%p1651_p2), 0  }
 0x25d LB: >> { %v1409_v13 = vld [vmem:[%s2055_s30] sm:$0xff]  ;;  %s1411_s8 = sadd.s32 1, %s2059_s6  ;;  %s1403_s7 = sadd.s32 1, %s2063_s7   ;;  %s2063_s7 = sphi %s2061_s7, %s1403_s7   ;;  %s2059_s6 = sphi %s2057_s6, %s2058_s6   ;;  %s2055_s30 = sphi %s2053_s30, %s1416_s30   ;;  %s2051_s28 = sphi %s2049_s28, %s1417_s28  }
 0x25e   : >> { %1410 = vst [vmem:[%s2051_s28] sm:$0xff] %v1409_v13  ;;  %p1412_p3 = scmp.ge.s32.totalorder %s1411_s8, %s2517_s29  ;;  %p1402_p5 = scmp.ge.s32.totalorder %s1403_s7, %s2517_s29 }
 0x260   : >> { %s2561_s8 = smov (%p1412_p3, %s1411_s8), 0  ;;  %1405 = sbr.rel (!%p1402_p5) target bundleno = 605 (0x25d), region = 149 }
 0x261   : >> { %s1652_s18 = sshll.u32 %s2561_s8, 3  ;;  %s2058_s6 = smov %s2561_s8  }
 0x262   : >> { %s1416_s30 = scalar_lea.vmem %s1397_s24, %s1652_s18 [#allocation4]   ;;  %s1417_s28 = scalar_lea.vmem %s1399_s27, %s1652_s18  }
 0x267 PF: > { %p13_p8 = scmp.ge.s32.totalorder %s2114_s22, 4   ;;  %s2553_s18 = smov %s2027_s19 }
 0x268   : > { %s2554_s19 = smov %s2122_s25  ;;  %s2555_s20 = smov %s2114_s22 }
 0x269   :  { %15 = sbr.rel (!%p13_p8) target bundleno = 2 (0x2), region = 160 }
 0x270   :  { %1433 = vsyncpa [#allocation3], 1 }
 0x271   :  { %1435 = vsyncpa [#allocation3 + $0x1], 1 }

</bundles_post_ra>
